<compile_context>
chip_gen: v7x
topology: tpu7x:2x2x1
jax: 0.10.0
libtpu: 0.0.40
codegen_flags: <defaults>
</compile_context>

<pallas_src>
import jax
import jax.numpy as jnp
from jax.experimental import pallas as pl
from jax.experimental.pallas import tpu as pltpu

_MIB = 1024 * 1024


# ---------------------------------------------------------------------------
# Kernels
# ---------------------------------------------------------------------------
def _ffn_kernel_resident(x_ref, w1_ref, b1_ref, w2_ref, b2_ref, o_ref):
    """Weights fully resident in VMEM: grid = (M tiles,), no reduction axis."""
    x = x_ref[...].astype(w1_ref.dtype)              # in-kernel cast (VPU, hides under MXU)
    h = jnp.dot(x, w1_ref[...], preferred_element_type=jnp.float32)
    h = jnp.maximum(h + b1_ref[...], 0.0)
    y = jnp.dot(h.astype(w2_ref.dtype), w2_ref[...],
                preferred_element_type=jnp.float32)
    # Dropout == identity in eval mode.
    o_ref[...] = (y + b2_ref[...]).astype(o_ref.dtype)


def _ffn_kernel_tiled(x_ref, w1_ref, b1_ref, w2_ref, b2_ref, o_ref, acc_ref):
    """Hidden dim tiled: grid = (M tiles, H tiles); f32 accumulator over H."""
    k = pl.program_id(1)

    @pl.when(k == 0)
    def _init():
        acc_ref[...] = jnp.zeros_like(acc_ref)

    x = x_ref[...].astype(w1_ref.dtype)
    h = jnp.dot(x, w1_ref[...], preferred_element_type=jnp.float32)
    h = jnp.maximum(h + b1_ref[...], 0.0)
    acc_ref[...] += jnp.dot(h.astype(w2_ref.dtype), w2_ref[...],
                            preferred_element_type=jnp.float32)

    @pl.when(k == pl.num_programs(1) - 1)
    def _finalize():
        # Second bias added exactly once; Dropout == identity in eval mode.
        o_ref[...] = (acc_ref[...] + b2_ref[...]).astype(o_ref.dtype)


# ---------------------------------------------------------------------------
# Tile selection
# ---------------------------------------------------------------------------
def _vmem_capacity_bytes():
    try:
        cap = int(pltpu.get_tpu_info().vmem_capacity_bytes)
    except Exception:
        cap = 64 * _MIB        # conservative fallback (v7x per-TensorCore VMEM)
    return max(16 * _MIB, min(cap, 128 * _MIB))


def _vmem_working_set(tm, th, c, x_bytes, o_bytes, w_bytes):
    ws = 2 * tm * c * (x_bytes + o_bytes)   # double-buffered x + out tiles
    ws += 2 * 2 * c * th * w_bytes          # double-buffered w1 + w2 tiles (conservative)
    ws += tm * th * (4 + w_bytes)           # f32 hidden intermediate + its bf16 copy
    ws += 2 * tm * c * 4                    # f32 accumulator + f32 result temp
    ws += 2 * (th + c) * 4                  # biases (negligible)
    return ws


def _tm_candidates(m, cap):
    """Token-tile candidates, descending, multiples of 8 (full M for small inputs)."""
    cap = max(8, (int(cap) // 8) * 8)
    if m <= cap:
        return [m]
    cands = []
    t = cap
    while t >= 8:
        cands.append(t)
        if t == 8:
            break
        t = max(8, (t // 2) // 8 * 8)
    return cands


def _th_candidates(h, cap):
    """Hidden-tile candidates: full H (residency) first, then 128-aligned divisors."""
    hi = h if cap is None else max(128, min(h, int(cap)))
    cands = []
    if h <= hi:
        cands.append(h)                       # full H -> weights resident, single k step
    t = (hi // 128) * 128
    while t >= 128:
        if h % t == 0 and t != h:
            cands.append(t)
        t -= 128
    if not cands:
        # TODO(synk): H not 128-aligned and larger than the cap; padding H would be
        # needed to tile it — fall back to a full-H block.
        cands.append(h)
    return cands


# ---------------------------------------------------------------------------
# Wrapper
# ---------------------------------------------------------------------------
def feed_forward(x, w1, b1, w2, b2, *, tm=1024, th=None,
                 compute_dtype=jnp.bfloat16, vmem_budget_bytes=None):
    """Fused MLP: relu(x @ w1 + b1) @ w2 + b2 (Dropout = identity / eval mode).

    x: (B, T, C).  w1: (C, H), b1: (H,), w2: (H, C), b2: (C,).
    tm: cap on the token tile (rows).  th: cap on the hidden tile; None = auto
    (prefer holding the full weights resident in VMEM when they fit).
    """
    B, T, C = x.shape
    Cw, H = w1.shape
    assert Cw == C and w2.shape == (H, C)
    M = B * T
    x2d = x.reshape(M, C)
    out_dtype = x.dtype

    cap = _vmem_capacity_bytes()
    budget = int(cap * 0.75) if vmem_budget_bytes is None else int(vmem_budget_bytes)

    w_bytes = jnp.dtype(compute_dtype).itemsize
    x_bytes = jnp.dtype(x.dtype).itemsize
    o_bytes = jnp.dtype(out_dtype).itemsize

    tm_cands = _tm_candidates(M, tm)
    th_cands = _th_candidates(H, th)

    # Prefer the largest TM (weight-reuse intensity), then the largest TH
    # (residency first), that fits the VMEM budget.
    TM, TH = tm_cands[-1], th_cands[-1]
    done = False
    for tmc in tm_cands:
        for thc in th_cands:
            if _vmem_working_set(tmc, thc, C, x_bytes, o_bytes, w_bytes) <= budget:
                TM, TH, done = tmc, thc, True
                break
        if done:
            break

    grid_m = pl.cdiv(M, TM)          # ragged last tile handled by Pallas (no padding)
    grid_k = H // TH                 # TH always divides H by construction
    resident = (TH == H)

    # One-time cast of weights to the MXU compute dtype (skipped if the caller
    # already passes bf16; pre-cast & cache for repeated forwards).
    w1c = w1 if w1.dtype == compute_dtype else w1.astype(compute_dtype)
    w2c = w2 if w2.dtype == compute_dtype else w2.astype(compute_dtype)
    b1c = b1.reshape(1, H).astype(jnp.float32)
    b2c = b2.reshape(1, C).astype(jnp.float32)

    flops = 4 * M * H * C                                        # two matmuls, 2*M*H*C each
    weight_stream = 2 * C * H * w_bytes * (1 if resident else grid_m)
    cost = pl.CostEstimate(
        flops=flops, transcendentals=0,
        bytes_accessed=int(M * C * x_bytes + M * C * o_bytes + weight_stream
                           + (H + C) * 4))

    compiler_params = pltpu.CompilerParams(
        dimension_semantics=(("parallel",) if resident else ("parallel", "arbitrary")),
        vmem_limit_bytes=int(cap * 0.9))

    if resident:
        out2d = pl.pallas_call(
            _ffn_kernel_resident,
            out_shape=jax.ShapeDtypeStruct((M, C), out_dtype),
            grid_spec=pltpu.PrefetchScalarGridSpec(
                num_scalar_prefetch=0,
                grid=(grid_m,),
                in_specs=[
                    pl.BlockSpec((TM, C), lambda i: (i, 0)),   # x tile
                    pl.BlockSpec((C, H), lambda i: (0, 0)),    # w1 (resident, DMA'd once)
                    pl.BlockSpec((1, H), lambda i: (0, 0)),    # b1 (resident)
                    pl.BlockSpec((H, C), lambda i: (0, 0)),    # w2 (resident, DMA'd once)
                    pl.BlockSpec((1, C), lambda i: (0, 0)),    # b2 (resident)
                ],
                out_specs=pl.BlockSpec((TM, C), lambda i: (i, 0)),
            ),
            compiler_params=compiler_params,
            cost_estimate=cost,
        )(x2d, w1c, b1c, w2c, b2c)
    else:
        out2d = pl.pallas_call(
            _ffn_kernel_tiled,
            out_shape=jax.ShapeDtypeStruct((M, C), out_dtype),
            grid_spec=pltpu.PrefetchScalarGridSpec(
                num_scalar_prefetch=0,
                grid=(grid_m, grid_k),
                in_specs=[
                    pl.BlockSpec((TM, C), lambda i, k: (i, 0)),   # x (VMEM-resident over k)
                    pl.BlockSpec((C, TH), lambda i, k: (0, k)),   # w1 tile
                    pl.BlockSpec((1, TH), lambda i, k: (0, k)),   # b1 tile
                    pl.BlockSpec((TH, C), lambda i, k: (k, 0)),   # w2 tile
                    pl.BlockSpec((1, C), lambda i, k: (0, 0)),    # b2 (resident)
                ],
                out_specs=pl.BlockSpec((TM, C), lambda i, k: (i, 0)),
                scratch_shapes=[pltpu.VMEM((TM, C), jnp.float32)],
            ),
            compiler_params=compiler_params,
            cost_estimate=cost,
        )(x2d, w1c, b1c, w2c, b2c)

    return out2d.reshape(B, T, C)


# ---------------------------------------------------------------------------
# Reference / init / test
# ---------------------------------------------------------------------------
def init_params(key, n_embd, dtype=jnp.float32):
    """Deterministic init mimicking nn.Linear's uniform(-1/sqrt(fan_in), +)."""
    h = 4 * n_embd
    k1, k2, k3, k4 = jax.random.split(key, 4)
    lim1 = 1.0 / (n_embd ** 0.5)
    lim2 = 1.0 / (h ** 0.5)
    w1 = jax.random.uniform(k1, (n_embd, h), dtype, minval=-lim1, maxval=lim1)
    b1 = jax.random.uniform(k2, (h,), dtype, minval=-lim1, maxval=lim1)
    w2 = jax.random.uniform(k3, (h, n_embd), dtype, minval=-lim2, maxval=lim2)
    b2 = jax.random.uniform(k4, (n_embd,), dtype, minval=-lim2, maxval=lim2)
    return w1, b1, w2, b2


def _ref_ffn(x, w1, b1, w2, b2):
    B, T, C = x.shape
    h = jnp.maximum(x.reshape(B * T, C) @ w1 + b1, 0.0)
    return (h @ w2 + b2).reshape(B, T, C)


if __name__ == "__main__":
    key = jax.random.PRNGKey(0)
    kx, kp, kx2, kp2, kx3 = jax.random.split(key, 5)

    # 1) Small shapes consistent with the module (resident path, single tile).
    B, T, n_embd = 2, 8, 32
    x = jax.random.normal(kx, (B, T, n_embd), dtype=jnp.float32)
    w1, b1, w2, b2 = init_params(kp, n_embd)
    out = jax.block_until_ready(feed_forward(x, w1, b1, w2, b2))
    ref = _ref_ffn(x, w1, b1, w2, b2)
    assert out.shape == (B, T, n_embd)
    # bf16 matmul inputs with f32 accumulation -> loose tolerance vs f32 reference.
    assert jnp.allclose(out, ref, atol=3e-2, rtol=3e-2), float(jnp.max(jnp.abs(out - ref)))

    # 2) Tiled reduction path + ragged M (no padding): grid = (cdiv(400,64)=7, 512/128=4).
    B2, T2, n2 = 2, 200, 128
    x2 = jax.random.normal(kx2, (B2, T2, n2), dtype=jnp.float32)
    p2 = init_params(kp2, n2)
    out2 = jax.block_until_ready(feed_forward(x2, *p2, tm=64, th=128))
    ref2 = _ref_ffn(x2, *p2)
    rel2 = jnp.max(jnp.abs(out2 - ref2)) / (jnp.max(jnp.abs(ref2)) + 1e-6)
    assert out2.shape == (B2, T2, n2)
    assert rel2 < 2e-2, float(rel2)

    # 3) Resident path with multiple token tiles + ragged last tile.
    B3, T3 = 2, 136                                  # M = 272 = 2*128 + 16
    x3 = jax.random.normal(kx3, (B3, T3, n2), dtype=jnp.float32)
    out3 = jax.block_until_ready(feed_forward(x3, *p2, tm=128))
    ref3 = _ref_ffn(x3, *p2)
    rel3 = jnp.max(jnp.abs(out3 - ref3)) / (jnp.max(jnp.abs(ref3)) + 1e-6)
    assert out3.shape == (B3, T3, n2)
    assert rel3 < 2e-2, float(rel3)

    print("KERNEL_OK")
</pallas_src>

<mosaic_0001>
module attributes {stable_mosaic.version = 11 : i64} {
  func.func @_ffn_kernel_resident(%arg0: i32, %arg1: memref<16x32xf32, #tpu.memory_space<vmem>>, %arg2: memref<32x128xbf16, #tpu.memory_space<vmem>>, %arg3: memref<1x128xf32, #tpu.memory_space<vmem>>, %arg4: memref<128x32xbf16, #tpu.memory_space<vmem>>, %arg5: memref<1x32xf32, #tpu.memory_space<vmem>>, %arg6: memref<16x32xf32, #tpu.memory_space<vmem>>) attributes {dimension_semantics = [#tpu.dimension_semantics<parallel>], iteration_bounds = array<i64: 1>, scalar_prefetch = 0 : i64, scratch_operands = 0 : i64, tpu.core_type = #tpu.core_type<tc>, window_params = [{transform_indices = @transform_0, window_bounds = array<i64: 16, 32>}, {pipeline_mode = #tpu.pipeline_mode<synchronous>, transform_indices = @transform_1, window_bounds = array<i64: 32, 128>}, {pipeline_mode = #tpu.pipeline_mode<synchronous>, transform_indices = @transform_2, window_bounds = array<i64: 1, 128>}, {pipeline_mode = #tpu.pipeline_mode<synchronous>, transform_indices = @transform_3, window_bounds = array<i64: 128, 32>}, {pipeline_mode = #tpu.pipeline_mode<synchronous>, transform_indices = @transform_4, window_bounds = array<i64: 1, 32>}, {transform_indices = @transform_5, window_bounds = array<i64: 16, 32>}]} {
    %c0 = arith.constant 0 : index
    %c0_0 = arith.constant 0 : index
    %0 = vector.load %arg1[%c0, %c0_0] : memref<16x32xf32, #tpu.memory_space<vmem>>, vector<16x32xf32>
    %1 = arith.truncf %0 : vector<16x32xf32> to vector<16x32xbf16>
    %c0_1 = arith.constant 0 : index
    %c0_2 = arith.constant 0 : index
    %2 = vector.load %arg2[%c0_1, %c0_2] : memref<32x128xbf16, #tpu.memory_space<vmem>>, vector<32x128xbf16>
    %cst = arith.constant dense<0.000000e+00> : vector<16x128xf32>
    %3 = tpu.matmul %1, %2, %cst {dimension_numbers = #tpu.dot_dimension_numbers<[1], [0], [0], [1], [0, 0, 1, 1], [], []>} : vector<16x32xbf16>, vector<32x128xbf16>, vector<16x128xf32> -> vector<16x128xf32>
    %c0_3 = arith.constant 0 : index
    %c0_4 = arith.constant 0 : index
    %4 = vector.load %arg3[%c0_3, %c0_4] : memref<1x128xf32, #tpu.memory_space<vmem>>, vector<1x128xf32>
    %5 = vector.broadcast %4 : vector<1x128xf32> to vector<16x128xf32>
    %6 = arith.addf %3, %5 : vector<16x128xf32>
    %cst_5 = arith.constant 0.000000e+00 : f32
    %7 = vector.broadcast %cst_5 : f32 to vector<16x128xf32>
    %8 = arith.maximumf %6, %7 : vector<16x128xf32>
    %9 = arith.truncf %8 : vector<16x128xf32> to vector<16x128xbf16>
    %c0_6 = arith.constant 0 : index
    %c0_7 = arith.constant 0 : index
    %10 = vector.load %arg4[%c0_6, %c0_7] : memref<128x32xbf16, #tpu.memory_space<vmem>>, vector<128x32xbf16>
    %cst_8 = arith.constant dense<0.000000e+00> : vector<16x32xf32>
    %11 = tpu.matmul %9, %10, %cst_8 {dimension_numbers = #tpu.dot_dimension_numbers<[1], [0], [0], [1], [0, 0, 1, 1], [], []>} : vector<16x128xbf16>, vector<128x32xbf16>, vector<16x32xf32> -> vector<16x32xf32>
    %c0_9 = arith.constant 0 : index
    %c0_10 = arith.constant 0 : index
    %12 = vector.load %arg5[%c0_9, %c0_10] : memref<1x32xf32, #tpu.memory_space<vmem>>, vector<1x32xf32>
    %13 = vector.broadcast %12 : vector<1x32xf32> to vector<16x32xf32>
    %14 = arith.addf %11, %13 : vector<16x32xf32>
    %c0_11 = arith.constant 0 : index
    %c0_12 = arith.constant 0 : index
    %15 = vector.load %arg6[%c0_11, %c0_12] : memref<16x32xf32, #tpu.memory_space<vmem>>, vector<16x32xf32>
    tpu.vector_store %arg6[%c0_11, %c0_12], %14 {strides = array<i32>} : memref<16x32xf32, #tpu.memory_space<vmem>>, vector<16x32xf32>,
    return
  }
  func.func @transform_0(%arg0: i32) -> (i32, i32) {
    %c0_i32 = arith.constant 0 : i32
    %c0_i32_0 = arith.constant 0 : i32
    return %arg0, %c0_i32 : i32, i32
  }
  func.func @transform_1(%arg0: i32) -> (i32, i32) {
    %c0_i32 = arith.constant 0 : i32
    %c0_i32_0 = arith.constant 0 : i32
    %c0_i32_1 = arith.constant 0 : i32
    return %c0_i32, %c0_i32_0 : i32, i32
  }
  func.func @transform_2(%arg0: i32) -> (i32, i32) {
    %c0_i32 = arith.constant 0 : i32
    %c0_i32_0 = arith.constant 0 : i32
    %c0_i32_1 = arith.constant 0 : i32
    return %c0_i32, %c0_i32_0 : i32, i32
  }
  func.func @transform_3(%arg0: i32) -> (i32, i32) {
    %c0_i32 = arith.constant 0 : i32
    %c0_i32_0 = arith.constant 0 : i32
    %c0_i32_1 = arith.constant 0 : i32
    return %c0_i32, %c0_i32_0 : i32, i32
  }
  func.func @transform_4(%arg0: i32) -> (i32, i32) {
    %c0_i32 = arith.constant 0 : i32
    %c0_i32_0 = arith.constant 0 : i32
    %c0_i32_1 = arith.constant 0 : i32
    return %c0_i32, %c0_i32_0 : i32, i32
  }
  func.func @transform_5(%arg0: i32) -> (i32, i32) {
    %c0_i32 = arith.constant 0 : i32
    %c0_i32_0 = arith.constant 0 : i32
    return %arg0, %c0_i32 : i32, i32
  }
}

</mosaic_0001>

<bundles_post_ra>
// kernel: tpu_custom_call.1
= control target key start
LH: loop header
LB: loop body
LE: loop exit
PB: predicated region body
PF: predicated region fallthrough
CT: control target
= control target key end

     0   :  { %v318_v1 = vmov 0.0   ;;  %vm319_vm0 = vmmov 0   ;;  %vm48_vm1 = vcmask 261120   ;;  %s410_s0 = inlined_call_operand.vmem [shape: f32[16,32], index: 0, kind: input, shape index: {}]   ;;  %s411_s1 = inlined_call_operand.vmem [shape: bf16[32,128], index: 1, kind: input, shape index: {}]   ;;  %s412_s2 = inlined_call_operand.vmem [shape: f32[1,128], index: 2, kind: input, shape index: {}]   ;;  %s413_s3 = inlined_call_operand.vmem [shape: bf16[128,32], index: 3, kind: input, shape index: {}]   ;;  %s414_s4 = inlined_call_operand.vmem [shape: f32[1,32], index: 4, kind: input, shape index: {}]   ;;  %s415_s5 = inlined_call_operand.hbm [shape: f32[16,32], index: 5, kind: output, shape index: {}]  }
   0x1   :  { %v284_v0 = vld [vmem:[%s411_s1] sm:$0xff]   ;;  %251 = vmatprep.subr.bf16.mxu0 %v318_v1  ;;  %v285_v2 = vld [vmem:[%s411_s1 + $0x8] sm:$0xff]   ;;  %259 = vmatprep.subr.bf16.mxu1 %v318_v1  ;;  %v288_v8 = vld [vmem:[%s413_s3 + $0x10] sm:$0xff]  }
   0x2   :  { %252 = vmatpush3.bf16.msra.mxu0 %v284_v0  ;;  %255 = vmatprep.mubr.msk.bf16.mxu0 %vm319_vm0, %v318_v1  ;;  %v22_v3 = vld [vmem:[%s410_s0] sm:$0xff]  ;;  %v23_v4 = vld [vmem:[%s410_s0 + $0x8] sm:$0xff] }
   0x3   :  { %253 = vmatprep.subr.bf16.mxu0 %v318_v1  ;;  %v286_v5 = vld [vmem:[%s413_s3] sm:$0xff]   ;;  %275 = vmatprep.mubr.msk.bf16.mxu1 %vm319_vm0, %v318_v1  ;;  %v24_v6 = vpack.c.bf16 %v23_v4, %v22_v3  ;;  %v287_v7 = vld [vmem:[%s413_s3 + $0x8] sm:$0xff]  }
   0x4   :  { %260 = vmatpush3.bf16.msra.mxu1 %v286_v5 }
   0x5   :  { %261 = vmatprep.subr.bf16.mxu1 %v318_v1 }
   0x6   :  { %254 = vmatpush3.bf16.msra.mxu0 %v285_v2 }
   0x8   :  { %262 = vmatpush3.bf16.msra.mxu1 %v287_v7 }
   0x9   :  { %256 = vmatmul.mubr.msk.bf16.vlgmr.msra.gmra.mrb[0].mxu0 %vm48_vm1, %v24_v6  ;;  %263 = vmatprep.subr.bf16.mxu1 %v318_v1 }
   0xa   :  { %10 = vsyncpa [#allocation3], 0  ;;  %v289_v9 = vld [vmem:[%s413_s3 + $0x18] sm:$0xff]   ;;  %v290_v10 = vld [vmem:[%s413_s3 + $0x20] sm:$0xff]  }
   0xb   :  { %v291_v11 = vld [vmem:[%s413_s3 + $0x28] sm:$0xff]   ;;  %v292_v12 = vld [vmem:[%s413_s3 + $0x30] sm:$0xff]   ;;  %v293_v13 = vld [vmem:[%s413_s3 + $0x38] sm:$0xff]   ;;  %s320_s3 = smov [#allocation2]  }
   0xc   :  { %264 = vmatpush3.bf16.msra.mxu1 %v288_v8  ;;  %v226_v14 = vld [vmem:[%s412_s2] ss:$0 sm:$0xff]  ;;  %s215_s19 = sshll.u32 %s320_s3, 4  ;;  %s216_s19 = int_to_ptr.vmem [resolvable:$true] %s215_s19 }
   0xd   :  { %265 = vmatprep.subr.bf16.mxu1 %v318_v1  ;;  %v230_v24 = vld [vmem:[%s414_s4] ss:$0 sm:$0xff]  ;;  %s294_s2 = scalar_lea.vmem %s216_s19, 256  ;;  %p299_p1 = scmp.lt.s32.totalorder %s216_s19, %s216_s19 }
   0xe   :  { %p295_p0 = scmp.ne.s32.totalorder %s216_s19, %s294_s2  ;;  %p300_p2 = scmp.lt.s32.totalorder %s294_s2, %s294_s2 }
  0x10   :  { %266 = vmatpush3.bf16.msra.mxu1 %v289_v9  ;;  %p301_p3 = por %p300_p2, %p299_p1 }
  0x11   :  { %267 = vmatprep.subr.bf16.mxu1 %v318_v1 }
  0x12   :  { %p302_p4 = pnand %p301_p3, %p295_p0 }
  0x14   :  { %268 = vmatpush3.bf16.msra.mxu1 %v290_v10 }
  0x15   :  { %269 = vmatprep.subr.bf16.mxu1 %v318_v1 }
  0x18   :  { %270 = vmatpush3.bf16.msra.mxu1 %v291_v11 }
  0x19   :  { %271 = vmatprep.subr.bf16.mxu1 %v318_v1 }
  0x1c   :  { %272 = vmatpush3.bf16.msra.mxu1 %v292_v12 }
  0x1d   :  { %273 = vmatprep.subr.bf16.mxu1 %v318_v1 }
  0x20   :  { %274 = vmatpush3.bf16.msra.mxu1 %v293_v13 }
  0xdc   :  { %v86_v15 = vpop.f32.mrb[0].mxu0 }
  0xdd   :  { %v87_v16 = vadd.f32 %v226_v14, %v86_v15  ;;  %v257_v17 = vpop.f32.mrb[1].mxu0 }
  0xde   :  { %v89_v18 = vpop.f32.mrb[2].mxu0 }
  0xdf   :  { %v90_v19 = vadd.f32 %v226_v14, %v89_v18  ;;  %v258_v20 = vpop.f32.mrb[3].mxu0  ;;  %v93_v21 = vmax.f32 %v87_v16, 0.0 }
  0xe1   :  { %v94_v22 = vmax.f32 %v90_v19, 0.0 }
  0xe3   :  { %v95_v23 = vpack.c.bf16 %v94_v22, %v93_v21 }
  0xe5   :  { %276 = vmatmul.mubr.bf16.vlgmr.msra.gmra.mrb[0].mxu1 %v95_v23 }
 0x1b8   :  { %v201_v25 = vpop.f32.mrb[0].mxu1 }
 0x1b9   :  { %v202_v26 = vadd.f32 %v230_v24, %v201_v25  ;;  %v277_v27 = vpop.f32.mrb[1].mxu1 }
 0x1ba   :  { %v204_v28 = vpop.f32.mrb[2].mxu1 }
 0x1bb   :  { %208 = vst.msk [vmem:[#allocation2] sm:$0xff] %vm48_vm1, %v202_v26  ;;  %v205_v29 = vadd.f32 %v230_v24, %v204_v28  ;;  %v278_v30 = vpop.f32.mrb[3].mxu1 }
 0x1bd   :  { %209 = vst.msk [vmem:[#allocation2 + $0x8] sm:$0xff] %vm48_vm1, %v205_v29 }
 0x1be   :  { %305 = shalt.err (!%p302_p4)
}
 0x1bf   :  { %s306_s21 = scalar_lea.hbm %s415_s5, 256 }
 0x1c0   :  { %p307_p5 = scmp.ne.s32.totalorder %s415_s5, %s306_s21  ;;  %p310_p6 = scmp.lt.u32.totalorder %s306_s21, %s415_s5 }
 0x1c2   :  { %p312_p7 = pnand %p310_p6, %p307_p5 }
 0x1c4   :  { %315 = shalt.err (!%p312_p7)
}
 0x1c5   :  { %s321_s26 = smov 128   ;;  %s322_s27 = smov 8  }
 0x1c6   :  { %221 = dma.vmem_to_hbm [thread:$0]  %s216_s19, 256, %s415_s5, [#allocation3], %s321_s26, %s321_s26, %s322_s27  }
 0x1c7   :  { %316 = dma.done.wait [#allocation3], 256  }
 0x1c8   :  { %317 = vsyncadd [#allocation3], 4294967040 }
 0x1c9   :  { %225 = vsyncpa [#allocation3], 1 }

</bundles_post_ra>
